<compile_context>
chip_gen: v6e
topology: v6e:2x2x1
jax: 0.10.0
libtpu: 0.0.40
codegen_flags: <defaults>
</compile_context>

<pallas_src>
import jax
import jax.numpy as jnp
from jax.experimental import pallas as pl
from jax.experimental.pallas import tpu as pltpu

CLAP_DIM = 512  # fixed by the module: Conditioner(512, output_dim)


def _clap_cond_kernel(audio_ref, w_emb_ref, w_proj_ref, b_proj_ref, out_ref, acc_ref):
    # audio_ref: [B, C, tk] bf16   w_emb_ref: [tk, 512] bf16
    # w_proj_ref: [512, D] f32     b_proj_ref: [1, D] f32
    # acc_ref (scratch): [B, 512] f32 accumulator, resident across the K grid.
    k = pl.program_id(0)

    @pl.when(k == 0)
    def _init():
        acc_ref[...] = jnp.zeros_like(acc_ref)

    # --- step 1 (partial): mono mixdown. torch uses mean(dim=1); the uniform 1/C
    # scale is cancelled exactly by the L2 normalization below, so a sum suffices.
    mono = jnp.sum(audio_ref[...], axis=1)  # [B, tk] bf16

    # --- step 2 (partial): surrogate CLAP encoder contraction on the MXU,
    # bf16 inputs, f32 accumulation.
    acc_ref[...] += jnp.dot(mono, w_emb_ref[...], preferred_element_type=jnp.float32)

    @pl.when(k == pl.num_programs(0) - 1)
    def _finalize():
        emb = acc_ref[...]  # [B, 512] f32
        # CLAP returns an L2-normalized embedding.
        inv_norm = jax.lax.rsqrt(
            jnp.sum(emb * emb, axis=-1, keepdims=True) + 1e-12
        )  # [B, 1]
        # --- step 4: proj_out Linear(512 -> D). inv_norm is a per-row scalar, so
        # it commutes with the matmul; scale the small [B, D] result instead of
        # the [B, 512] embedding.
        proj = jnp.dot(emb, w_proj_ref[...], preferred_element_type=jnp.float32)
        out_ref[...] = proj * inv_norm + b_proj_ref[...]  # broadcast bias [1, D]


def _pick_tk(T):
    """K-tile size: multiple of 128 (MXU / lane aligned), >=512 when T allows."""
    if T >= 16384:
        return 2048
    if T >= 1024:
        return 512
    return 128


def clap_audio_conditioner(audios, w_emb, w_proj, b_proj):
    """audios: [B, C, T] float32. Returns [proj_embedding [B,1,D], mask [B,1]]."""
    B, C, T = audios.shape
    assert w_emb.shape == (T, CLAP_DIM)
    D = w_proj.shape[1]
    assert w_proj.shape == (CLAP_DIM, D)
    assert b_proj.shape == (1, D)

    # Stream the large operands (audio, w_emb) in bf16; keep proj weights in f32.
    audios_bf = audios.astype(jnp.bfloat16)
    w_emb_bf = w_emb.astype(jnp.bfloat16)

    # Pad T up to a multiple of the K tile (zero rows contribute nothing).
    tk = _pick_tk(T)
    t_pad = pl.cdiv(T, tk) * tk
    if t_pad != T:
        audios_bf = jnp.pad(audios_bf, ((0, 0), (0, 0), (0, t_pad - T)))
        w_emb_bf = jnp.pad(w_emb_bf, ((0, t_pad - T), (0, 0)))
    num_k = t_pad // tk

    proj = pl.pallas_call(
        _clap_cond_kernel,
        out_shape=jax.ShapeDtypeStruct((B, D), jnp.float32),
        grid_spec=pltpu.PrefetchScalarGridSpec(
            num_scalar_prefetch=0,
            grid=(num_k,),
            in_specs=[
                pl.BlockSpec((B, C, tk), lambda k: (0, 0, k)),        # audio K-tile
                pl.BlockSpec((tk, CLAP_DIM), lambda k: (k, 0)),       # w_emb K-tile
                pl.BlockSpec((CLAP_DIM, D), lambda k: (0, 0)),        # resident
                pl.BlockSpec((1, D), lambda k: (0, 0)),               # resident
            ],
            out_specs=pl.BlockSpec((B, D), lambda k: (0, 0)),         # resident output
            scratch_shapes=[pltpu.VMEM((B, CLAP_DIM), jnp.float32)],  # f32 accumulator
        ),
        compiler_params=pltpu.CompilerParams(
            dimension_semantics=("arbitrary",),        # K is a reduction axis
            vmem_limit_bytes=32 * 1024 * 1024,         # safe on v5e/v6e/v7x
        ),
    )(audios_bf, w_emb_bf, w_proj, b_proj)

    # step 3: unsqueeze(1)  +  step 5: attention-mask of ones (glue, plain JAX)
    audio_embedding = proj[:, None, :]            # [B, 1, D]
    mask = jnp.ones((B, 1), dtype=jnp.float32)    # torch.ones(B, 1)
    return [audio_embedding, mask]


def _reference(audios, w_emb, w_proj, b_proj):
    """Pure-JAX reference of the same surrogate math (f32)."""
    mono = jnp.mean(audios, axis=1)                                   # [B, T]
    emb = mono @ w_emb                                                # [B, 512]
    emb = emb * jax.lax.rsqrt(jnp.sum(emb * emb, -1, keepdims=True) + 1e-12)
    return emb @ w_proj + b_proj                                      # [B, D]


if __name__ == "__main__":
    key = jax.random.PRNGKey(0)
    k_audio, k_emb, k_proj, k_bias = jax.random.split(key, 4)

    B, C, T = 2, 2, 1024       # small stereo audio batch
    OUTPUT_DIM = 128           # output_dim != 512 -> proj_out is a Linear

    audios = jax.random.normal(k_audio, (B, C, T), dtype=jnp.float32)

    # Deterministic parameter init (synthetic; no checkpoint load).
    w_emb = jax.random.normal(k_emb, (T, CLAP_DIM), dtype=jnp.float32) * (1.0 / T**0.5)
    w_proj = jax.random.normal(k_proj, (CLAP_DIM, OUTPUT_DIM), dtype=jnp.float32) * (
        1.0 / CLAP_DIM**0.5
    )
    b_proj = jax.random.normal(k_bias, (1, OUTPUT_DIM), dtype=jnp.float32) * 0.01

    out_emb, out_mask = clap_audio_conditioner(audios, w_emb, w_proj, b_proj)
    jax.block_until_ready(out_emb)
    jax.block_until_ready(out_mask)

    assert out_emb.shape == (B, 1, OUTPUT_DIM)
    assert out_mask.shape == (B, 1)

    # Sanity check vs. f32 reference (loose tolerance: kernel streams in bf16).
    ref = _reference(audios, w_emb, w_proj, b_proj)
    assert jnp.allclose(out_emb[:, 0, :], ref, atol=5e-2, rtol=5e-2), (
        float(jnp.max(jnp.abs(out_emb[:, 0, :] - ref)))
    )

    print("KERNEL_OK")
</pallas_src>

<mosaic_0001>
module attributes {stable_mosaic.version = 11 : i64} {
  func.func @_clap_cond_kernel(%arg0: i32, %arg1: memref<2x2x512xbf16, #tpu.memory_space<vmem>>, %arg2: memref<512x512xbf16, #tpu.memory_space<vmem>>, %arg3: memref<512x128xf32, #tpu.memory_space<vmem>>, %arg4: memref<1x128xf32, #tpu.memory_space<vmem>>, %arg5: memref<2x128xf32, #tpu.memory_space<vmem>>, %arg6: memref<2x512xf32, #tpu.memory_space<vmem>>) attributes {dimension_semantics = [#tpu.dimension_semantics<arbitrary>], iteration_bounds = array<i64: 2>, scalar_prefetch = 0 : i64, scratch_operands = 1 : i64, tpu.core_type = #tpu.core_type<tc>, window_params = [{transform_indices = @transform_0, window_bounds = array<i64: 2, 2, 512>}, {transform_indices = @transform_1, window_bounds = array<i64: 512, 512>}, {pipeline_mode = #tpu.pipeline_mode<synchronous>, transform_indices = @transform_2, window_bounds = array<i64: 512, 128>}, {pipeline_mode = #tpu.pipeline_mode<synchronous>, transform_indices = @transform_3, window_bounds = array<i64: 1, 128>}, {pipeline_mode = #tpu.pipeline_mode<synchronous>, transform_indices = @transform_4, window_bounds = array<i64: 2, 128>}]} {
    %c0_i32 = arith.constant 0 : i32
    %0 = arith.cmpi eq, %arg0, %c0_i32 : i32
    %1 = arith.extui %0 : i1 to i32
    %c0_i32_0 = arith.constant 0 : i32
    %2 = arith.cmpi ne, %1, %c0_i32_0 : i32
    scf.if %2 {
      %cst_11 = arith.constant 0.000000e+00 : f32
      %15 = vector.broadcast %cst_11 : f32 to vector<2x512xf32>
      %c0_12 = arith.constant 0 : index
      %c0_13 = arith.constant 0 : index
      %16 = vector.load %arg6[%c0_12, %c0_13] : memref<2x512xf32, #tpu.memory_space<vmem>>, vector<2x512xf32>
      tpu.vector_store %arg6[%c0_12, %c0_13], %15 {strides = array<i32>} : memref<2x512xf32, #tpu.memory_space<vmem>>, vector<2x512xf32>,
    } else {
    }
    %c0 = arith.constant 0 : index
    %c0_1 = arith.constant 0 : index
    %c0_2 = arith.constant 0 : index
    %3 = vector.load %arg1[%c0, %c0_1, %c0_2] : memref<2x2x512xbf16, #tpu.memory_space<vmem>>, vector<2x2x512xbf16>
    %4 = arith.extf %3 : vector<2x2x512xbf16> to vector<2x2x512xf32>
    %cst = arith.constant dense<0.000000e+00> : vector<2x512xf32>
    %5 = vector.multi_reduction <add>, %4, %cst [1] : vector<2x2x512xf32> to vector<2x512xf32>
    %6 = arith.truncf %5 : vector<2x512xf32> to vector<2x512xbf16>
    %c0_3 = arith.constant 0 : index
    %c0_4 = arith.constant 0 : index
    %7 = vector.load %arg6[%c0_3, %c0_4] : memref<2x512xf32, #tpu.memory_space<vmem>>, vector<2x512xf32>
    %c0_5 = arith.constant 0 : index
    %c0_6 = arith.constant 0 : index
    %8 = vector.load %arg2[%c0_5, %c0_6] : memref<512x512xbf16, #tpu.memory_space<vmem>>, vector<512x512xbf16>
    %cst_7 = arith.constant dense<0.000000e+00> : vector<2x512xf32>
    %9 = tpu.matmul %6, %8, %cst_7 {dimension_numbers = #tpu.dot_dimension_numbers<[1], [0], [0], [1], [0, 0, 1, 1], [], []>} : vector<2x512xbf16>, vector<512x512xbf16>, vector<2x512xf32> -> vector<2x512xf32>
    %10 = arith.addf %7, %9 : vector<2x512xf32>
    %c0_8 = arith.constant 0 : index
    %c0_9 = arith.constant 0 : index
    %11 = vector.load %arg6[%c0_8, %c0_9] : memref<2x512xf32, #tpu.memory_space<vmem>>, vector<2x512xf32>
    tpu.vector_store %arg6[%c0_8, %c0_9], %10 {strides = array<i32>} : memref<2x512xf32, #tpu.memory_space<vmem>>, vector<2x512xf32>,
    %c1_i32 = arith.constant 1 : i32
    %12 = arith.cmpi eq, %arg0, %c1_i32 : i32
    %13 = arith.extui %12 : i1 to i32
    %c0_i32_10 = arith.constant 0 : i32
    %14 = arith.cmpi ne, %13, %c0_i32_10 : i32
    scf.if %14 {
      %c0_11 = arith.constant 0 : index
      %c0_12 = arith.constant 0 : index
      %15 = vector.load %arg6[%c0_11, %c0_12] : memref<2x512xf32, #tpu.memory_space<vmem>>, vector<2x512xf32>
      %16 = arith.mulf %15, %15 : vector<2x512xf32>
      %cst_13 = arith.constant dense<0.000000e+00> : vector<2xf32>
      %17 = vector.multi_reduction <add>, %16, %cst_13 [1] : vector<2x512xf32> to vector<2xf32>
      %18 = vector.shape_cast %17 : vector<2xf32> to vector<2x1xf32>
      %cst_14 = arith.constant 9.99999996E-13 : f32
      %19 = vector.broadcast %cst_14 : f32 to vector<2x1xf32>
      %20 = arith.addf %18, %19 : vector<2x1xf32>
      %21 = math.rsqrt %20 : vector<2x1xf32>
      %c0_15 = arith.constant 0 : index
      %c0_16 = arith.constant 0 : index
      %22 = vector.load %arg3[%c0_15, %c0_16] : memref<512x128xf32, #tpu.memory_space<vmem>>, vector<512x128xf32>
      %cst_17 = arith.constant dense<0.000000e+00> : vector<2x128xf32>
      %23 = tpu.matmul %15, %22, %cst_17 {dimension_numbers = #tpu.dot_dimension_numbers<[1], [0], [0], [1], [0, 0, 1, 1], [], []>} : vector<2x512xf32>, vector<512x128xf32>, vector<2x128xf32> -> vector<2x128xf32>
      %24 = vector.broadcast %21 : vector<2x1xf32> to vector<2x128xf32>
      %25 = arith.mulf %23, %24 : vector<2x128xf32>
      %c0_18 = arith.constant 0 : index
      %c0_19 = arith.constant 0 : index
      %26 = vector.load %arg4[%c0_18, %c0_19] : memref<1x128xf32, #tpu.memory_space<vmem>>, vector<1x128xf32>
      %27 = vector.broadcast %26 : vector<1x128xf32> to vector<2x128xf32>
      %28 = arith.addf %25, %27 : vector<2x128xf32>
      %c0_20 = arith.constant 0 : index
      %c0_21 = arith.constant 0 : index
      %29 = vector.load %arg5[%c0_20, %c0_21] : memref<2x128xf32, #tpu.memory_space<vmem>>, vector<2x128xf32>
      tpu.vector_store %arg5[%c0_20, %c0_21], %28 {strides = array<i32>} : memref<2x128xf32, #tpu.memory_space<vmem>>, vector<2x128xf32>,
    } else {
    }
    return
  }
  func.func @transform_0(%arg0: i32) -> (i32, i32, i32) {
    %c0_i32 = arith.constant 0 : i32
    %c0_i32_0 = arith.constant 0 : i32
    %c0_i32_1 = arith.constant 0 : i32
    return %c0_i32, %c0_i32_0, %arg0 : i32, i32, i32
  }
  func.func @transform_1(%arg0: i32) -> (i32, i32) {
    %c0_i32 = arith.constant 0 : i32
    %c0_i32_0 = arith.constant 0 : i32
    return %arg0, %c0_i32 : i32, i32
  }
  func.func @transform_2(%arg0: i32) -> (i32, i32) {
    %c0_i32 = arith.constant 0 : i32
    %c0_i32_0 = arith.constant 0 : i32
    %c0_i32_1 = arith.constant 0 : i32
    return %c0_i32, %c0_i32_0 : i32, i32
  }
  func.func @transform_3(%arg0: i32) -> (i32, i32) {
    %c0_i32 = arith.constant 0 : i32
    %c0_i32_0 = arith.constant 0 : i32
    %c0_i32_1 = arith.constant 0 : i32
    return %c0_i32, %c0_i32_0 : i32, i32
  }
  func.func @transform_4(%arg0: i32) -> (i32, i32) {
    %c0_i32 = arith.constant 0 : i32
    %c0_i32_0 = arith.constant 0 : i32
    %c0_i32_1 = arith.constant 0 : i32
    return %c0_i32, %c0_i32_0 : i32, i32
  }
}

</mosaic_0001>

<bundles_post_ra>
// kernel: tpu_custom_call.1
= control target key start
LH: loop header
LB: loop body
LE: loop exit
PB: predicated region body
PF: predicated region fallthrough
CT: control target
= control target key end

     0   :  { %9 = vsyncpa [#allocation4], 0  ;;  %s2781_s0 = inlined_call_operand.hbm [shape: bf16[2,2,1024], index: 0, kind: input, shape index: {}]   ;;  %s2782_s1 = inlined_call_operand.hbm [shape: bf16[1024,512], index: 1, kind: input, shape index: {}]   ;;  %s2783_s2 = inlined_call_operand.hbm [shape: f32[512,128], index: 2, kind: input, shape index: {}]   ;;  %s2784_s3 = inlined_call_operand.vmem [shape: f32[1,128], index: 3, kind: input, shape index: {}]   ;;  %s2785_s4 = inlined_call_operand.hbm [shape: f32[2,128], index: 4, kind: output, shape index: {}]  }
   0x1   :  { %11 = vsyncpa [#allocation4 + $0x1], 0 }
   0x2   :  { %12 = vsyncpa [#allocation7], 0 }
   0x3   :  { %14 = vsyncpa [#allocation7 + $0x1], 0 }
   0x4   :  { %15 = vsyncpa [#allocation5], 0  ;;  %s2412_s15 = smov 0   ;;  %s2414_s16 = smov 0  }
   0x5   :  { %s2416_s17 = smov 0   ;;  %s2418_s18 = smov 0  }
   0x6 LB: > { %s2431_s19 = sadd.s32 4294967295, %s2373_s18   ;;  %s2434_s20 = sadd.s32 1, %s2373_s18   ;;  %s2373_s18 = sphi %s2418_s18, %s2800_s18   ;;  %s2369_s17 = sphi %s2416_s17, %s2799_s17   ;;  %s2365_s16 = sphi %s2414_s16, %s2798_s16   ;;  %s2361_s15 = sphi %s2412_s15, %s2797_s15  }
   0x7   : > { %s25_s21 = ssub.s32 %s2373_s18, %s2434_s20  ;;  %s28_s22 = sadd.s32 1, %s2369_s17 }
   0x8   : > { %p26_p0 = scmp.eq.s32.totalorder %s25_s21, 0  ;;  %p35_p1 = scmp.ne.s32.totalorder %s2369_s17, %s2365_s16 }
   0x9   : > { %p36_p2 = scmp.eq.s32.totalorder %s2373_s18, 0  ;;  %p41_p3 = scmp.ne.s32.totalorder %s2365_s16, %s2361_s15 }
   0xa   : > { %s2444_s23 = scalar_select %p26_p0, %s2369_s17, %s28_s22  }
   0xb   : > { %p2446_p4 = por %p36_p2, %p35_p1  ;;  %p2786_p5 = scmp.eq.s32.totalorder %s2431_s19, 0 }
   0xc   : > { %p1730_p6 = scmp.ge.s32.totalorder %s2373_s18, 1  ;;  %p141_p7 = scmp.lt.s32.totalorder %s2373_s18, 3 }
   0xd   : > { %p2455_p8 = por %p2786_p5, %p41_p3  ;;  %s2375_s27 = smov [#allocation8]  }
   0xe   : > { %p2460_p10 = pnand %p1730_p6, %p141_p7  ;;  %s153_s28 = sshll.u32 %s2375_s27, 4  ;;  %s154_s28 = int_to_ptr.vmem [resolvable:$true] %s153_s28 }
   0xf   : > { %s2789_s25 = scalar_select %p2455_p8, 1, 0 }
  0x10   : > { %p1968_p11 = pneg %p2460_p10  ;;  %p1980_p13 = scmp.lt.s32.totalorder %s2373_s18, 2 }
  0x11   : > { %s2474_s30 = sand.u32 1, %s2369_s17   ;;  %s1879_s5 = sshll.u32 %s2373_s18, 6 }
  0x12   : > { %p2468_p12 = pnand %p1968_p11, %p2786_p5  ;;  %p2479_p0 = pnand %p1980_p13, %p2446_p4 }
  0x13   : > { %s2232_s7 = scalar_lea.vmem %s154_s28, 8192  ;;  %p2240_p7 = scmp.lt.s32.totalorder %s154_s28, %s154_s28 }
  0x14   : > { %p2223_p1 = pneg %p2468_p12  ;;  %p2233_p2 = scmp.ne.s32.totalorder %s154_s28, %s2232_s7 }
  0x15   : > { %p2241_p11 = scmp.lt.s32.totalorder %s2232_s7, %s2232_s7 }
  0x16   : > { %p2235_p3 = pnand %p2233_p2, %p2223_p1 }
  0x17   : > { %p2242_p9 = por %p2241_p11, %p2240_p7 }
  0x18   : > { %p2236_p6 = pneg %p2235_p3 }
  0x1a   : > { %p2243_p5 = pnand %p2242_p9, %p2236_p6 }
  0x1c   : > { %2246 = shalt.err (!%p2243_p5)
}
  0x1d   : > { %s2376_s8 = smov 128   ;;  %s2377_s9 = smov 8  }
  0x1e   : > { %1971 = dma.hbm_to_vmem [thread:$0]  (!%p2468_p12), %s2783_s2, 8192, %s154_s28, [#allocation7], %s2376_s8, %s2376_s8, %s2377_s9  }
  0x1f   : > { %s1733_s12 = sshll.u32 %s2474_s30, 3  ;;  %s2496_s15 = scalar_lea.hbm %s2781_s0, %s1879_s5 }
  0x20   : > { %s174_s21 = scalar_lea.vmem [#allocation3], %s1733_s12  ;;  %s191_s24 = sand.u32 1, %s2373_s18  }
  0x21   : > { %s181_s22 = sshll.u32 %s174_s21, 4  ;;  %s171_s27 = scalar_lea.sflag [#allocation4], %s2474_s30  ;;  %s2498_s22 = int_to_ptr.vmem [resolvable:$true] %s181_s22 }
  0x22   : > { %s2247_s29 = scalar_lea.hbm %s2496_s15, 128  ;;  %p2249_p5 = pneg %p2479_p0 }
  0x23   : > { %p2248_p4 = scmp.ne.s32.totalorder %s2496_s15, %s2247_s29  ;;  %s2252_s7 = scalar_lea.hbm %s2781_s0, 256 }
  0x24   : > { %p2253_p13 = scmp.lt.s32.totalorder %s2496_s15, %s2781_s0  ;;  %p2254_p1 = scmp.lt.s32.totalorder %s2252_s7, %s2247_s29 }
  0x25   : > { %p2250_p9 = pnand %p2249_p5, %p2248_p4 }
  0x26   : > { %p2255_p2 = por %p2254_p1, %p2253_p13 }
  0x27   : > { %p2251_p12 = pneg %p2250_p9 }
  0x29   : > { %p2256_p3 = pnand %p2255_p2, %p2251_p12 }
  0x2b   : > { %2259 = shalt.err (!%p2256_p3)
}
  0x2c   : > { %s2260_s11 = scalar_lea.vmem %s2498_s22, 128  ;;  %s2378_s12 = smov [#allocation3]  }
  0x2d   : > { %p2261_p6 = scmp.ne.s32.totalorder %s2498_s22, %s2260_s11  ;;  %s2265_s13 = sshll.u32 %s2378_s12, 4  ;;  %s2266_s13 = int_to_ptr.vmem [resolvable:$false] %s2265_s13 }
  0x2e   : > { %s2267_s14 = scalar_lea.vmem %s2266_s13, 256  ;;  %p2268_p4 = scmp.lt.s32.totalorder %s2498_s22, %s2266_s13 }
  0x2f   : > { %p2263_p7 = pnand %p2261_p6, %p2249_p5  ;;  %p2269_p9 = scmp.lt.s32.totalorder %s2267_s14, %s2260_s11 }
  0x31   : > { %p2264_p11 = pneg %p2263_p7  ;;  %p2270_p8 = por %p2269_p9, %p2268_p4 }
  0x33   : > { %p2271_p13 = pnand %p2270_p8, %p2264_p11 }
  0x35   : > { %2274 = shalt.err (!%p2271_p13)
}
  0x36   : > { %s2379_s21 = smov 64   ;;  %s2380_s29 = smov 4  }
  0x37   : > { %1975 = dma.hbm_to_vmem [thread:$0]  (!%p2479_p0), %s2496_s15, 128, %s2498_s22, %s171_s27, %s2376_s8, %s2379_s21, %s2380_s29  }
  0x38   : > { %s1736_s28 = sshll.u32 %s2474_s30, 10  ;;  %s1881_s5 = sshll.u32 %s2373_s18, 14 }
  0x39   : > { %s2534_s10 = scalar_lea.hbm %s2782_s1, %s1881_s5  ;;  %s195_s11 = scalar_lea.vmem [#allocation6], %s1736_s28 }
  0x3a   : > { %s203_s12 = sshll.u32 %s195_s11, 4  ;;  %s2540_s13 = scalar_lea.sflag [#allocation7], %s191_s24  ;;  %s2536_s12 = int_to_ptr.vmem [resolvable:$true] %s203_s12 }
  0x3b   : > { %s2275_s14 = scalar_lea.hbm %s2534_s10, 16384  ;;  %s2280_s15 = scalar_lea.hbm %s2782_s1, 32768 }
  0x3c   : > { %p2276_p8 = scmp.ne.s32.totalorder %s2534_s10, %s2275_s14  ;;  %p2281_p2 = scmp.lt.s32.totalorder %s2534_s10, %s2782_s1 }
  0x3d   : > { %p2282_p3 = scmp.lt.s32.totalorder %s2280_s15, %s2275_s14 }
  0x3e   : > { %p2278_p12 = pnand %p2276_p8, %p2249_p5 }
  0x3f   : > { %p2283_p6 = por %p2282_p3, %p2281_p2 }
  0x40   : > { %p2279_p1 = pneg %p2278_p12 }
  0x42   : > { %p2284_p7 = pnand %p2283_p6, %p2279_p1 }
  0x44   : > { %2287 = shalt.err (!%p2284_p7)
}
  0x45   : > { %s2288_s18 = scalar_lea.vmem %s2536_s12, 16384  ;;  %s2381_s24 = smov [#allocation6]  }
  0x46   : > { %p2289_p11 = scmp.ne.s32.totalorder %s2536_s12, %s2288_s18  ;;  %s2293_s21 = sshll.u32 %s2381_s24, 4  ;;  %s2294_s21 = int_to_ptr.vmem [resolvable:$false] %s2293_s21 }
  0x47   : > { %s2295_s29 = scalar_lea.vmem %s2294_s21, 32768  ;;  %p2296_p13 = scmp.lt.s32.totalorder %s2536_s12, %s2294_s21 }
  0x48   : > { %p2291_p4 = pnand %p2289_p11, %p2249_p5  ;;  %p2297_p8 = scmp.lt.s32.totalorder %s2295_s29, %s2288_s18 }
  0x4a   : > { %p2292_p9 = pneg %p2291_p4  ;;  %p2298_p12 = por %p2297_p8, %p2296_p13 }
  0x4c   : > { %p2299_p2 = pnand %p2298_p12, %p2292_p9 }
  0x4e   : > { %2302 = shalt.err (!%p2299_p2)
}
  0x4f   : > { %s2382_s28 = smov 256   ;;  %s2383_s5 = smov 16  }
  0x50   : > { %1978 = dma.hbm_to_vmem [thread:$0]  (!%p2479_p0), %s2534_s10, 16384, %s2536_s12, %s2540_s13, %s2382_s28, %s2382_s28, %s2383_s5  }
  0x51   : > { %215 = sbr.rel (%p2460_p10) target bundleno = 694 (0x2b6), region = 36  ;;  %s217_s7 = sand.u32 (!%p2460_p10), 1, %s2365_s16  }
  0x52   : > { %s1741_s9 = sshll.u32 (!%p2460_p10), %s217_s7, 3  ;;  %s218_s11 = scalar_lea.sflag (!%p2460_p10), [#allocation4], %s217_s7 }
  0x53   : > { %s2568_s14 = scalar_lea.vmem (!%p2460_p10), [#allocation3], %s1741_s9  ;;  %p2793_p5 = scmp.ne.s32.totalorder (!%p2460_p10), %s2789_s25, 0 }
  0x56   : > { %2344 = dma.done.wait (%p2793_p5), %s218_s11, 128  }
  0x57   : > { %2346 = vsyncadd (%p2793_p5), %s218_s11, 4294967168  ;;  %s226_s30 = sand.u32 1, %s2431_s19   ;;  %s1742_s6 = sshll.u32 %s217_s7, 10 }
  0x58   : > { %s227_s10 = scalar_lea.sflag [#allocation7], %s226_s30  ;;  %s2575_s12 = scalar_lea.vmem [#allocation6], %s1742_s6 }
  0x59   : > { %2348 = dma.done.wait (%p2793_p5), %s227_s10, 16384  }
  0x5a   : > { %2350 = vsyncadd (%p2793_p5), %s227_s10, 4294950912  ;;  %p2794_p10 = scmp.eq.s32.totalorder %s2431_s19, 0 }
  0x5c   : > { %2352 = dma.done.wait (%p2794_p10), [#allocation7], 8192   ;;  %p2795_p0 = pmov %p2794_p10 }
  0x5d   : > { %p2796_p1 = scmp.ne.s32.totalorder %s2431_s19, 0 }
  0x5e   : > { %2354 = vsyncadd (%p2795_p0), [#allocation7], 4294959104 }
  0x5f   : > { %264 = sbr.rel (%p2796_p1) target bundleno = 102 (0x66), region = 52 }
  0x64   : > { %v2384_v0 = vmov 0.0  }
  0x65   : > { %265 = vst [vmem:[#allocation2] sm:$0xff] %v2384_v0 }
  0x66 PF: > { %v2026_v1 = vld [vmem:[%s2575_s12 + $0xe4] ss:$16 sps:$4 sm:$0xff]   ;;  %v2030_v3 = vld [vmem:[%s2575_s12 + $0xe0] ss:$16 sps:$4 sm:$0xff]   ;;  %v2385_v39 = vmov 1983009808   ;;  %v276_v41 = vlaneseq }
  0x67   : > { %v2028_v2 = vld [vmem:[%s2575_s12 + $0x2e4] ss:$16 sps:$4 sm:$0xff]   ;;  %1177 = vmatprep.subr.bf16.mxu0 %v2026_v1  ;;  %v2031_v4 = vld [vmem:[%s2575_s12 + $0x2e0] ss:$16 sps:$4 sm:$0xff]   ;;  %v274_v40 = vunpack.c.l.s4 %v2385_v39  ;;  %vm314_vm0 = vcmask 1041408   ;;  %vm524_vm1 = vcmask 1041409  }
  0x68   : > { %1218 = vmatprep.subr.bf16.mxu1 %v2028_v2  ;;  %v2032_v5 = vld [vmem:[%s2575_s12 + $0xc4] ss:$16 sps:$4 sm:$0xff]   ;;  %1178 = vmatpush1.bf16.msra.mxu0 %v2030_v3  ;;  %v2036_v7 = vld [vmem:[%s2575_s12 + $0xc0] ss:$16 sps:$4 sm:$0xff]   ;;  %v277_v47 = vshrl.u32 %v276_v41, 7  ;;  %p1873_p3 = scmp.ne.s32.totalorder %s2431_s19, 1 }
  0x69   : > { %1219 = vmatpush1.bf16.msra.mxu1 %v2031_v4  ;;  %v2034_v6 = vld [vmem:[%s2575_s12 + $0x2c4] ss:$16 sps:$4 sm:$0xff]   ;;  %1179 = vmatprep.subr.bf16.mxu0 %v2032_v5  ;;  %v2037_v8 = vld [vmem:[%s2575_s12 + $0x2c0] ss:$16 sps:$4 sm:$0xff]   ;;  %v275_v46 = vunpack.c.0.s8 %v274_v40 }
  0x6a   : > { %1220 = vmatprep.subr.bf16.mxu1 %v2034_v6  ;;  %v2038_v9 = vld [vmem:[%s2575_s12 + $0xa4] ss:$16 sps:$4 sm:$0xff]   ;;  %v2042_v11 = vld [vmem:[%s2575_s12 + $0xa0] ss:$16 sps:$4 sm:$0xff]  }
  0x6b   : > { %v2040_v10 = vld [vmem:[%s2575_s12 + $0x2a4] ss:$16 sps:$4 sm:$0xff]   ;;  %v2043_v12 = vld [vmem:[%s2575_s12 + $0x2a0] ss:$16 sps:$4 sm:$0xff]   ;;  %v2633_v52 = vsub.s32 %v275_v46, %v277_v47 }
  0x6c   : > { %1180 = vmatpush1.bf16.msra.mxu0 %v2036_v7  ;;  %v2044_v13 = vld [vmem:[%s2575_s12 + $0x84] ss:$16 sps:$4 sm:$0xff]   ;;  %v2048_v15 = vld [vmem:[%s2575_s12 + $0x80] ss:$16 sps:$4 sm:$0xff]  }
  0x6d   : > { %1221 = vmatpush1.bf16.msra.mxu1 %v2037_v8  ;;  %1181 = vmatprep.subr.bf16.mxu0 %v2038_v9  ;;  %v2046_v14 = vld [vmem:[%s2575_s12 + $0x284] ss:$16 sps:$4 sm:$0xff]   ;;  %v2049_v16 = vld [vmem:[%s2575_s12 + $0x280] ss:$16 sps:$4 sm:$0xff]  }
  0x6e   : > { %1222 = vmatprep.subr.bf16.mxu1 %v2040_v10  ;;  %v2050_v17 = vld [vmem:[%s2575_s12 + $0x64] ss:$16 sps:$4 sm:$0xff]   ;;  %v2054_v19 = vld [vmem:[%s2575_s12 + $0x60] ss:$16 sps:$4 sm:$0xff]  }
  0x6f   : > { %v2052_v18 = vld [vmem:[%s2575_s12 + $0x264] ss:$16 sps:$4 sm:$0xff]   ;;  %v2055_v20 = vld [vmem:[%s2575_s12 + $0x260] ss:$16 sps:$4 sm:$0xff]  }
  0x70   : > { %1182 = vmatpush1.bf16.msra.mxu0 %v2042_v11  ;;  %v2056_v21 = vld [vmem:[%s2575_s12 + $0x44] ss:$16 sps:$4 sm:$0xff]   ;;  %v2060_v23 = vld [vmem:[%s2575_s12 + $0x40] ss:$16 sps:$4 sm:$0xff]  }
  0x71   : > { %1223 = vmatpush1.bf16.msra.mxu1 %v2043_v12  ;;  %1183 = vmatprep.subr.bf16.mxu0 %v2044_v13  ;;  %v2058_v22 = vld [vmem:[%s2575_s12 + $0x244] ss:$16 sps:$4 sm:$0xff]   ;;  %v2061_v24 = vld [vmem:[%s2575_s12 + $0x240] ss:$16 sps:$4 sm:$0xff]  }
  0x72   : > { %1224 = vmatprep.subr.bf16.mxu1 %v2046_v14  ;;  %v2062_v25 = vld [vmem:[%s2575_s12 + $0x24] ss:$16 sps:$4 sm:$0xff]   ;;  %v2066_v27 = vld [vmem:[%s2575_s12 + $0x20] ss:$16 sps:$4 sm:$0xff]  }
  0x73   : > { %v2064_v26 = vld [vmem:[%s2575_s12 + $0x224] ss:$16 sps:$4 sm:$0xff]   ;;  %v2067_v28 = vld [vmem:[%s2575_s12 + $0x220] ss:$16 sps:$4 sm:$0xff]  }
  0x74   : > { %1184 = vmatpush1.bf16.msra.mxu0 %v2048_v15  ;;  %v2068_v29 = vld [vmem:[%s2575_s12 + $0x4] ss:$16 sps:$4 sm:$0xff]   ;;  %v2072_v31 = vld [vmem:[%s2575_s12] ss:$16 sps:$4 sm:$0xff]  }
  0x75   : > { %1225 = vmatpush1.bf16.msra.mxu1 %v2049_v16  ;;  %1185 = vmatprep.subr.bf16.mxu0 %v2050_v17  ;;  %v2070_v30 = vld [vmem:[%s2575_s12 + $0x204] ss:$16 sps:$4 sm:$0xff]   ;;  %v2073_v32 = vld [vmem:[%s2575_s12 + $0x200] ss:$16 sps:$4 sm:$0xff]  }
  0x76   : > { %1226 = vmatprep.subr.bf16.mxu1 %v2052_v18  ;;  %v2074_v33 = vld [vmem:[%s2575_s12 + $0x1e4] ss:$16 sps:$4 sm:$0xff]   ;;  %v2078_v35 = vld [vmem:[%s2575_s12 + $0x1e0] ss:$16 sps:$4 sm:$0xff]  }
  0x77   : > { %v2076_v34 = vld [vmem:[%s2575_s12 + $0x3e4] ss:$16 sps:$4 sm:$0xff]   ;;  %v2079_v36 = vld [vmem:[%s2575_s12 + $0x3e0] ss:$16 sps:$4 sm:$0xff]  }
  0x78   : > { %1186 = vmatpush1.bf16.msra.mxu0 %v2054_v19  ;;  %v2080_v37 = vld [vmem:[%s2575_s12 + $0x1c4] ss:$16 sps:$4 sm:$0xff]   ;;  %v2084_v42 = vld [vmem:[%s2575_s12 + $0x1c0] ss:$16 sps:$4 sm:$0xff]  }
  0x79   : > { %1227 = vmatpush1.bf16.msra.mxu1 %v2055_v20  ;;  %1187 = vmatprep.subr.bf16.mxu0 %v2056_v21  ;;  %v2082_v38 = vld [vmem:[%s2575_s12 + $0x3c4] ss:$16 sps:$4 sm:$0xff]   ;;  %v2085_v43 = vld [vmem:[%s2575_s12 + $0x3c0] ss:$16 sps:$4 sm:$0xff]  }
  0x7a   : > { %1228 = vmatprep.subr.bf16.mxu1 %v2058_v22  ;;  %v2086_v44 = vld [vmem:[%s2575_s12 + $0x1a4] ss:$16 sps:$4 sm:$0xff]   ;;  %v2090_v48 = vld [vmem:[%s2575_s12 + $0x1a0] ss:$16 sps:$4 sm:$0xff]  }
  0x7b   : > { %v2088_v45 = vld [vmem:[%s2575_s12 + $0x3a4] ss:$16 sps:$4 sm:$0xff]   ;;  %v2091_v49 = vld [vmem:[%s2575_s12 + $0x3a0] ss:$16 sps:$4 sm:$0xff]  }
  0x7c   : > { %1188 = vmatpush1.bf16.msra.mxu0 %v2060_v23  ;;  %v2092_v50 = vld [vmem:[%s2575_s12 + $0x184] ss:$16 sps:$4 sm:$0xff]   ;;  %v2096_v54 = vld [vmem:[%s2575_s12 + $0x180] ss:$16 sps:$4 sm:$0xff]  }
  0x7d   : > { %1229 = vmatpush1.bf16.msra.mxu1 %v2061_v24  ;;  %1189 = vmatprep.subr.bf16.mxu0 %v2062_v25  ;;  %v2094_v51 = vld [vmem:[%s2575_s12 + $0x384] ss:$16 sps:$4 sm:$0xff]   ;;  %v2097_v57 = vld [vmem:[%s2575_s12 + $0x380] ss:$16 sps:$4 sm:$0xff]  }
  0x7e   : > { %1230 = vmatprep.subr.bf16.mxu1 %v2064_v26  ;;  %v1883_v53 = vld [vmem:[%s2568_s14] sm:$0xff]  }
  0x7f   : > { %v1884_v55 = vunpack.c.l.bf16 %v1883_v53  ;;  %v1885_v56 = vunpack.c.h.bf16 %v1883_v53  ;;  %v2098_v58 = vld [vmem:[%s2575_s12 + $0x164] ss:$16 sps:$4 sm:$0xff]   ;;  %v2102_v63 = vld [vmem:[%s2575_s12 + $0x160] ss:$16 sps:$4 sm:$0xff]  }
  0x80   : > { %1190 = vmatpush1.bf16.msra.mxu0 %v2066_v27  ;;  %v2100_v59 = vld [vmem:[%s2575_s12 + $0x364] ss:$16 sps:$4 sm:$0xff]   ;;  %v2103_v1 = vld [vmem:[%s2575_s12 + $0x360] ss:$16 sps:$4 sm:$0xff]  }
  0x81   : > { %1231 = vmatpush1.bf16.msra.mxu1 %v2067_v28  ;;  %1191 = vmatprep.subr.bf16.mxu0 %v2068_v29  ;;  %v279_v60 = vrot.slane %v1884_v55, %v2633_v52  ;;  %v296_v61 = vrot.slane %v1885_v56, %v2633_v52  ;;  %v272_v62 = vcombine.high %v1884_v55, %v1884_v55  ;;  %v2104_v6 = vld [vmem:[%s2575_s12 + $0x144] ss:$16 sps:$4 sm:$0xff]   ;;  %v2108_v19 = vld [vmem:[%s2575_s12 + $0x140] ss:$16 sps:$4 sm:$0xff]  }
  0x82   : > { %1232 = vmatprep.subr.bf16.mxu1 %v2070_v30  ;;  %v289_v0 = vcombine.high %v1885_v56, %v1885_v56  ;;  %v2106_v10 = vld [vmem:[%s2575_s12 + $0x344] ss:$16 sps:$4 sm:$0xff]   ;;  %v2109_v24 = vld [vmem:[%s2575_s12 + $0x340] ss:$16 sps:$4 sm:$0xff]  }
  0x83   : > { %v287_v2 = vcombine.high %v279_v60, %v279_v60  ;;  %v304_v3 = vcombine.high %v296_v61, %v296_v61  ;;  %v286_v4 = vrot.slane %v272_v62, %v2633_v52  ;;  %v315_v5 = vsel %vm314_vm0, %v279_v60, 0.0  ;;  %v2110_v25 = vld [vmem:[%s2575_s12 + $0x124] ss:$16 sps:$4 sm:$0xff]   ;;  %v2114_v39 = vld [vmem:[%s2575_s12 + $0x120] ss:$16 sps:$4 sm:$0xff]  }
  0x84   : > { %1192 = vmatpush1.bf16.msra.mxu0 %v2072_v31  ;;  %v303_v7 = vrot.slane %v289_v0, %v2633_v52  ;;  %v316_v8 = vrot.slane %v315_v5, 4  ;;  %v343_v9 = vsel %vm314_vm0, %v296_v61, 0.0  ;;  %v2112_v30 = vld [vmem:[%s2575_s12 + $0x324] ss:$16 sps:$4 sm:$0xff]   ;;  %v2115_v40 = vld [vmem:[%s2575_s12 + $0x320] ss:$16 sps:$4 sm:$0xff]  }
  0x85   : > { %1233 = vmatpush1.bf16.msra.mxu1 %v2073_v32  ;;  %1193 = vmatprep.subr.bf16.mxu0 %v2074_v33  ;;  %v322_v11 = vsel %vm314_vm0, %v287_v2, 0.0  ;;  %v350_v12 = vsel %vm314_vm0, %v304_v3, 0.0  ;;  %v288_v13 = vcombine.high %v286_v4, %v286_v4  ;;  %v344_v14 = vrot.slane %v343_v9, 4  ;;  %v2118_v46 = vld [vmem:[%s2575_s12 + $0x304] ss:$16 sps:$4 sm:$0xff]  }
  0x86   : > { %1234 = vmatprep.subr.bf16.mxu1 %v2076_v34  ;;  %v323_v15 = vrot.slane %v322_v11, 4  ;;  %v351_v16 = vrot.slane %v350_v12, 4  ;;  %v305_v17 = vcombine.high %v303_v7, %v303_v7  ;;  %v317_v18 = vadd.f32 %v316_v8, %v315_v5  ;;  %v2120_v60 = vld [vmem:[%s2575_s12 + $0x100] ss:$16 sps:$4 sm:$0xff]  }
  0x87   : > { %v336_v20 = vsel %vm314_vm0, %v288_v13, 0.0  ;;  %v345_v21 = vadd.f32 %v344_v14, %v343_v9  ;;  %v329_v22 = vsel %vm314_vm0, %v286_v4, 0.0  ;;  %v357_v23 = vsel %vm314_vm0, %v303_v7, 0.0  ;;  %v2121_v61 = vld [vmem:[%s2575_s12 + $0x300] ss:$16 sps:$4 sm:$0xff]  }
  0x88   : > { %1194 = vmatpush2.bf16.msra.mxu0 %v2078_v35  ;;  %v324_v26 = vadd.f32 %v323_v15, %v322_v11  ;;  %v352_v27 = vadd.f32 %v351_v16, %v350_v12  ;;  %v337_v28 = vrot.slane %v336_v20, 4  ;;  %v364_v29 = vsel %vm314_vm0, %v305_v17, 0.0  ;;  %v2127_v11 = vld [vmem:[%s2575_s12 + $0x2ec] ss:$16 sps:$4 sm:$0xff]  }
  0x89   : > { %1235 = vmatpush2.bf16.msra.mxu1 %v2079_v36  ;;  %1195 = vmatprep.subr.bf16.mxu0 %v2080_v37  ;;  %v365_v31 = vrot.slane %v364_v29, 4  ;;  %v318_v32 = vrot.slane %v317_v18, 2  ;;  %v346_v33 = vrot.slane %v345_v21, 2  ;;  %v330_v34 = vrot.slane %v329_v22, 4 }
  0x8a   : > { %1236 = vmatprep.subr.bf16.mxu1 %v2082_v38  ;;  %v325_v35 = vrot.slane %v324_v26, 2  ;;  %v353_v36 = vrot.slane %v352_v27, 2  ;;  %v338_v37 = vadd.f32 %v337_v28, %v336_v20  ;;  %v358_v38 = vrot.slane %v357_v23, 4 }
  0x8b   : > { %v366_v41 = vadd.f32 %v365_v31, %v364_v29 }
  0x8c   : > { %1196 = vmatpush2.bf16.msra.mxu0 %v2084_v42  ;;  %v319_v42 = vadd.f32 %v318_v32, %v317_v18  ;;  %v326_v47 = vadd.f32 %v325_v35, %v324_v26 }
  0x8d   : > { %1237 = vmatpush2.bf16.msra.mxu1 %v2085_v43  ;;  %1197 = vmatprep.subr.bf16.mxu0 %v2086_v44  ;;  %v347_v43 = vadd.f32 %v346_v33, %v345_v21  ;;  %v331_v44 = vadd.f32 %v330_v34, %v329_v22  ;;  %v2122_v34 = vld [vmem:[%s2575_s12 + $0xe8] ss:$16 sps:$4 sm:$0xff]  }
  0x8e   : > { %1238 = vmatprep.subr.bf16.mxu1 %v2088_v45  ;;  %v2116_v45 = vld [vmem:[%s2575_s12 + $0x104] ss:$16 sps:$4 sm:$0xff]   ;;  %v320_v53 = vrot.slane %v319_v42, 1  ;;  %v327_v56 = vrot.slane %v326_v47, 1 }
  0x8f   : > { %v332_v55 = vrot.slane %v331_v44, 2 }
  0x90   : > { %1198 = vmatpush2.bf16.msra.mxu0 %v2090_v48  ;;  %v354_v48 = vadd.f32 %v353_v36, %v352_v27  ;;  %v328_v2 = vadd.f32 %v327_v56, %v326_v47  ;;  %v2130_v36 = vld [vmem:[%s2575_s12 + $0xcc] ss:$16 sps:$4 sm:$0xff]  }
  0x91   : > { %1239 = vmatpush2.bf16.msra.mxu1 %v2091_v49  ;;  %1199 = vmatprep.subr.bf16.mxu0 %v2092_v50  ;;  %v339_v49 = vrot.slane %v338_v37, 2  ;;  %v359_v50 = vadd.f32 %v358_v38, %v357_v23  ;;  %v2139_v47 = vld [vmem:[%s2575_s12 + $0x2ac] ss:$16 sps:$4 sm:$0xff]  }
  0x92   : > { %1240 = vmatprep.subr.bf16.mxu1 %v2094_v51  ;;  %v367_v51 = vrot.slane %v366_v41, 2  ;;  %v372_v12 = vpack.c.bf16 %v328_v2, %v328_v2  ;;  %v2151_v56 = vld [vmem:[%s2575_s12 + $0x26c] ss:$16 sps:$4 sm:$0xff]   ;;  %v2161_v2 = vld [vmem:[%s2575_s12 + $0x228] ss:$16 sps:$4 sm:$0xff]  }
  0x94   : > { %1200 = vmatpush2.bf16.msra.mxu0 %v2096_v54  ;;  %v348_v54 = vrot.slane %v347_v43, 1  ;;  %v368_v62 = vadd.f32 %v367_v51, %v366_v41  ;;  %v517_v20 = vunpack.c.l.b16 %v372_v12  ;;  %v2145_v51 = vld [vmem:[%s2575_s12 + $0x28c] ss:$16 sps:$4 sm:$0xff]  }
  0x95   : > { %1241 = vmatpush2.bf16.msra.mxu1 %v2097_v57  ;;  %1201 = vmatprep.subr.bf16.mxu0 %v2098_v58  ;;  %v355_v57 = vrot.slane %v354_v48, 1  ;;  %v340_v58 = vadd.f32 %v339_v49, %v338_v37  ;;  %v2137_v49 = vld [vmem:[%s2575_s12 + $0x2a8] ss:$16 sps:$4 sm:$0xff]   ;;  %v2181_v12 = vld [vmem:[%s2575_s12 + $0x3cc] ss:$16 sps:$4 sm:$0xff]  }
  0x96   : > { %1242 = vmatprep.subr.bf16.mxu1 %v2100_v59  ;;  %v360_v59 = vrot.slane %v359_v50, 2  ;;  %v349_v0 = vadd.f32 %v348_v54, %v347_v43  ;;  %v369_v7 = vrot.slane %v368_v62, 1  ;;  %v2133_v43 = vld [vmem:[%s2575_s12 + $0x2cc] ss:$16 sps:$4 sm:$0xff]   ;;  %v2143_v54 = vld [vmem:[%s2575_s12 + $0x288] ss:$16 sps:$4 sm:$0xff]  }
  0x97   : > { %v356_v3 = vadd.f32 %v355_v57, %v354_v48  ;;  %v341_v4 = vrot.slane %v340_v58, 1  ;;  %v2142_v48 = vld [vmem:[%s2575_s12 + $0x8c] ss:$16 sps:$4 sm:$0xff]  }
  0x98   : > { %1202 = vmatpush2.bf16.msra.mxu0 %v2102_v63  ;;  %v321_v63 = vadd.f32 %v320_v53, %v319_v42  ;;  %v361_v5 = vadd.f32 %v360_v59, %v359_v50  ;;  %v375_v9 = vpack.c.bf16 %v349_v0, %v349_v0  ;;  %v370_v16 = vadd.f32 %v369_v7, %v368_v62  ;;  %v2128_v42 = vld [vmem:[%s2575_s12 + $0xc8] ss:$16 sps:$4 sm:$0xff]   ;;  %v2148_v53 = vld [vmem:[%s2575_s12 + $0x6c] ss:$16 sps:$4 sm:$0xff]  }
  0x99   : > { %1243 = vmatpush2.bf16.msra.mxu1 %v2103_v1  ;;  %1203 = vmatprep.subr.bf16.mxu0 %v2104_v6  ;;  %v333_v1 = vadd.f32 %v332_v55, %v331_v44  ;;  %v2124_v6 = vld [vmem:[%s2575_s12 + $0xec] ss:$16 sps:$4 sm:$0xff]   ;;  %v376_v13 = vpack.c.bf16 %v356_v3, %v356_v3  ;;  %v342_v14 = vadd.f32 %v341_v4, %v340_v58  ;;  %v2140_v50 = vld [vmem:[%s2575_s12 + $0x88] ss:$16 sps:$4 sm:$0xff]  }
  0x9a   : > { %1244 = vmatprep.subr.bf16.mxu1 %v2106_v10  ;;  %v371_v8 = vpack.c.bf16 %v321_v63, %v321_v63  ;;  %v362_v15 = vrot.slane %v361_v5, 1  ;;  %v520_v18 = vunpack.c.l.b16 %v375_v9  ;;  %v2136_v44 = vld [vmem:[%s2575_s12 + $0xac] ss:$16 sps:$4 sm:$0xff]   ;;  %v2146_v55 = vld [vmem:[%s2575_s12 + $0x68] ss:$16 sps:$4 sm:$0xff]  }
  0x9b   : > { %v334_v10 = vrot.slane %v333_v1, 1  ;;  %v521_v21 = vunpack.c.l.b16 %v376_v13  ;;  %v374_v22 = vpack.c.bf16 %v342_v14, %v342_v14  ;;  %v2154_v57 = vld [vmem:[%s2575_s12 + $0x4c] ss:$16 sps:$4 sm:$0xff]   ;;  %v2149_v58 = vld [vmem:[%s2575_s12 + $0x268] ss:$16 sps:$4 sm:$0xff]  }
  0x9c   : > { %1204 = vmatpush2.bf16.msra.mxu0 %v2108_v19  ;;  %v516_v17 = vunpack.c.l.b16 %v371_v8  ;;  %v363_v23 = vadd.f32 %v362_v15, %v361_v5  ;;  %v2152_v59 = vld [vmem:[%s2575_s12 + $0x48] ss:$16 sps:$4 sm:$0xff]   ;;  %v2163_v0 = vld [vmem:[%s2575_s12 + $0x22c] ss:$16 sps:$4 sm:$0xff]  }
  0x9d   : > { %1245 = vmatpush2.bf16.msra.mxu1 %v2109_v24  ;;  %1205 = vmatprep.subr.bf16.mxu0 %v2110_v25  ;;  %v335_v19 = vadd.f32 %v334_v10, %v333_v1  ;;  %v378_v24 = vpack.c.bf16 %v370_v16, %v370_v16  ;;  %v526_v27 = vsel %vm524_vm1, %v521_v21, %v517_v20  ;;  %v519_v28 = vunpack.c.l.b16 %v374_v22  ;;  %v2155_v62 = vld [vmem:[%s2575_s12 + $0x248] ss:$16 sps:$4 sm:$0xff]   ;;  %v2166_v1 = vld [vmem:[%s2575_s12 + $0xc] ss:$16 sps:$4 sm:$0xff]  }
  0x9e   : > { %1246 = vmatprep.subr.bf16.mxu1 %v2112_v30  ;;  %v525_v25 = vsel %vm524_vm1, %v520_v18, %v516_v17  ;;  %v377_v30 = vpack.c.bf16 %v363_v23, %v363_v23  ;;  %v530_v31 = vpack.c.b16 %v526_v27, %v526_v27  ;;  %v2158_v63 = vld [vmem:[%s2575_s12 + $0x28] ss:$16 sps:$4 sm:$0xff]   ;;  %v2169_v4 = vld [vmem:[%s2575_s12 + $0x20c] ss:$16 sps:$4 sm:$0xff]  }
  0x9f   : > { %v373_v26 = vpack.c.bf16 %v335_v19, %v335_v19  ;;  %v2670_v29 = vpack.c.b16 %v525_v25, %v525_v25  ;;  %v523_v32 = vunpack.c.l.b16 %v378_v24  ;;  %v2164_v3 = vld [vmem:[%s2575_s12 + $0x8] ss:$16 sps:$4 sm:$0xff]   ;;  %v2172_v5 = vld [vmem:[%s2575_s12 + $0x1ec] ss:$16 sps:$4 sm:$0xff]  }
  0xa0   : > { %1206 = vmatpush2.bf16.msra.mxu0 %v2114_v39  ;;  %v522_v35 = vunpack.c.l.b16 %v377_v30  ;;  %1209 = vmatprep.mubr.bf16.mxu0 %v530_v31  ;;  %v2170_v7 = vld [vmem:[%s2575_s12 + $0x1e8] ss:$16 sps:$4 sm:$0xff]   ;;  %v2175_v8 = vld [vmem:[%s2575_s12 + $0x3ec] ss:$16 sps:$4 sm:$0xff]  }
  0xa1   : > { %1247 = vmatpush2.bf16.msra.mxu1 %v2115_v40  ;;  %1207 = vmatprep.subr.bf16.mxu0 %v2116_v45  ;;  %v518_v33 = vunpack.c.l.b16 %v373_v26  ;;  %v528_v37 = vsel %vm524_vm1, %v523_v32, %v519_v28  ;;  %v2125_v40 = vld [vmem:[%s2575_s12 + $0x2e8] ss:$16 sps:$4 sm:$0xff]   ;;  %v2178_v9 = vld [vmem:[%s2575_s12 + $0x1cc] ss:$16 sps:$4 sm:$0xff]  }
  0xa2   : > { %1248 = vmatprep.subr.bf16.mxu1 %v2118_v46  ;;  %v532_v38 = vpack.c.b16 %v528_v37, %v528_v37  ;;  %v2131_v45 = vld [vmem:[%s2575_s12 + $0x2c8] ss:$16 sps:$4 sm:$0xff]   ;;  %v2184_v13 = vld [vmem:[%s2575_s12 + $0x1ac] ss:$16 sps:$4 sm:$0xff]  }
  0xa3   : > { %v527_v39 = vsel %vm524_vm1, %v522_v35, %v518_v33  ;;  %v2134_v46 = vld [vmem:[%s2575_s12 + $0xa8] ss:$16 sps:$4 sm:$0xff]   ;;  %v2187_v16 = vld [vmem:[%s2575_s12 + $0x3ac] ss:$16 sps:$4 sm:$0xff]  }
  0xa4   : > { %1208 = vmatpush2.bf16.msra.mxu0 %v2120_v60  ;;  %v2678_v41 = vpack.c.b16 %v527_v39, %v527_v39  ;;  %1250 = vmatprep.mubr.bf16.mxu1 %v532_v38  ;;  %v2157_v60 = vld [vmem:[%s2575_s12 + $0x24c] ss:$16 sps:$4 sm:$0xff]   ;;  %v2173_v10 = vld [vmem:[%s2575_s12 + $0x3e8] ss:$16 sps:$4 sm:$0xff]  }
  0xa5   : > { %1249 = vmatpush2.bf16.msra.mxu1 %v2121_v61  ;;  %1259 = vmatprep.subr.bf16.mxu0 %v2124_v6  ;;  %v2160_v61 = vld [vmem:[%s2575_s12 + $0x2c] ss:$16 sps:$4 sm:$0xff]   ;;  %v2167_v6 = vld [vmem:[%s2575_s12 + $0x208] ss:$16 sps:$4 sm:$0xff]  }
  0xa6   : > { %1300 = vmatprep.subr.bf16.mxu1 %v2127_v11  ;;  %v2176_v11 = vld [vmem:[%s2575_s12 + $0x1c8] ss:$16 sps:$4 sm:$0xff]   ;;  %v2190_v17 = vld [vmem:[%s2575_s12 + $0x18c] ss:$16 sps:$4 sm:$0xff]  }
  0xa7   : > { %1210 = vmatmul.mubr.bf16.vlgmr.msra.gmra.mxu0 %v2670_v29  ;;  %v2179_v14 = vld [vmem:[%s2575_s12 + $0x3c8] ss:$16 sps:$4 sm:$0xff]   ;;  %v2193_v20 = vld [vmem:[%s2575_s12 + $0x38c] ss:$16 sps:$4 sm:$0xff]  }
  0xa8   : > { %1260 = vmatpush1.bf16.msra.mxu0 %v2122_v34  ;;  %1291 = vmatprep.mubr.bf16.mxu0 %v530_v31  ;;  %v2182_v15 = vld [vmem:[%s2575_s12 + $0x1a8] ss:$16 sps:$4 sm:$0xff]   ;;  %v2196_v21 = vld [vmem:[%s2575_s12 + $0x16c] ss:$16 sps:$4 sm:$0xff]  }
  0xa9   : > { %1261 = vmatprep.subr.bf16.mxu0 %v2130_v36  ;;  %1251 = vmatmul.mubr.bf16.vlgmr.msra.gmra.mxu1 %v2678_v41  ;;  %v2185_v18 = vld [vmem:[%s2575_s12 + $0x3a8] ss:$16 sps:$4 sm:$0xff]   ;;  %v2199_v24 = vld [vmem:[%s2575_s12 + $0x36c] ss:$16 sps:$4 sm:$0xff]  }
  0xaa   : > { %1301 = vmatpush1.bf16.msra.mxu1 %v2125_v40  ;;  %1332 = vmatprep.mubr.bf16.mxu1 %v532_v38  ;;  %v2188_v19 = vld [vmem:[%s2575_s12 + $0x188] ss:$16 sps:$4 sm:$0xff]   ;;  %v2202_v25 = vld [vmem:[%s2575_s12 + $0x14c] ss:$16 sps:$4 sm:$0xff]  }
  0xab   : > { %1302 = vmatprep.subr.bf16.mxu1 %v2133_v43  ;;  %v2191_v22 = vld [vmem:[%s2575_s12 + $0x388] ss:$16 sps:$4 sm:$0xff]   ;;  %v2205_v28 = vld [vmem:[%s2575_s12 + $0x34c] ss:$16 sps:$4 sm:$0xff]  }
  0xac   : > { %1262 = vmatpush1.bf16.msra.mxu0 %v2128_v42  ;;  %v2194_v23 = vld [vmem:[%s2575_s12 + $0x168] ss:$16 sps:$4 sm:$0xff]   ;;  %v2208_v30 = vld [vmem:[%s2575_s12 + $0x12c] ss:$16 sps:$4 sm:$0xff]  }
  0xad   : > { %1263 = vmatprep.subr.bf16.mxu0 %v2136_v44  ;;  %v2197_v26 = vld [vmem:[%s2575_s12 + $0x368] ss:$16 sps:$4 sm:$0xff]   ;;  %v2211_v33 = vld [vmem:[%s2575_s12 + $0x32c] ss:$16 sps:$4 sm:$0xff]  }
  0xae   : > { %1303 = vmatpush1.bf16.msra.mxu1 %v2131_v45  ;;  %v2200_v27 = vld [vmem:[%s2575_s12 + $0x148] ss:$16 sps:$4 sm:$0xff]   ;;  %v2214_v34 = vld [vmem:[%s2575_s12 + $0x10c] ss:$16 sps:$4 sm:$0xff]  }
  0xaf   : > { %1304 = vmatprep.subr.bf16.mxu1 %v2139_v47  ;;  %v2203_v31 = vld [vmem:[%s2575_s12 + $0x348] ss:$16 sps:$4 sm:$0xff]   ;;  %v2217_v37 = vld [vmem:[%s2575_s12 + $0x30c] ss:$16 sps:$4 sm:$0xff]  }
  0xb0   : > { %1264 = vmatpush1.bf16.msra.mxu0 %v2134_v46  ;;  %v2206_v32 = vld [vmem:[%s2575_s12 + $0x128] ss:$16 sps:$4 sm:$0xff]  }
  0xb1   : > { %1265 = vmatprep.subr.bf16.mxu0 %v2142_v48  ;;  %v2209_v35 = vld [vmem:[%s2575_s12 + $0x328] ss:$16 sps:$4 sm:$0xff]  }
  0xb2   : > { %1305 = vmatpush1.bf16.msra.mxu1 %v2137_v49  ;;  %v2212_v36 = vld [vmem:[%s2575_s12 + $0x108] ss:$16 sps:$4 sm:$0xff]  }
  0xb3   : > { %1306 = vmatprep.subr.bf16.mxu1 %v2145_v51  ;;  %v2215_v38 = vld [vmem:[%s2575_s12 + $0x308] ss:$16 sps:$4 sm:$0xff]  }
  0xb4   : > { %1266 = vmatpush1.bf16.msra.mxu0 %v2140_v50 }
  0xb5   : > { %1267 = vmatprep.subr.bf16.mxu0 %v2148_v53 }
  0xb6   : > { %1307 = vmatpush1.bf16.msra.mxu1 %v2143_v54 }
  0xb7   : > { %1308 = vmatprep.subr.bf16.mxu1 %v2151_v56 }
  0xb8   : > { %1268 = vmatpush1.bf16.msra.mxu0 %v2146_v55 }
  0xb9   : > { %1269 = vmatprep.subr.bf16.mxu0 %v2154_v57 }
  0xba   : > { %1309 = vmatpush1.bf16.msra.mxu1 %v2149_v58 }
  0xbb   : > { %1310 = vmatprep.subr.bf16.mxu1 %v2157_v60 }
  0xbc   : > { %1270 = vmatpush1.bf16.msra.mxu0 %v2152_v59 }
  0xbd   : > { %1271 = vmatprep.subr.bf16.mxu0 %v2160_v61 }
  0xbe   : > { %1311 = vmatpush1.bf16.msra.mxu1 %v2155_v62 }
  0xbf   : > { %1312 = vmatprep.subr.bf16.mxu1 %v2163_v0 }
  0xc0   : > { %1272 = vmatpush1.bf16.msra.mxu0 %v2158_v63  ;;  %v379_v63 = vld [vmem:[#allocation2] sm:$0xff] }
  0xc1   : > { %1273 = vmatprep.subr.bf16.mxu0 %v2166_v1 }
  0xc2   : > { %1313 = vmatpush1.bf16.msra.mxu1 %v2161_v2 }
  0xc3   : > { %1314 = vmatprep.subr.bf16.mxu1 %v2169_v4 }
  0xc4   : > { %1274 = vmatpush1.bf16.msra.mxu0 %v2164_v3 }
  0xc5   : > { %1275 = vmatprep.subr.bf16.mxu0 %v2172_v5 }
  0xc6   : > { %1315 = vmatpush1.bf16.msra.mxu1 %v2167_v6 }
  0xc7   : > { %1316 = vmatprep.subr.bf16.mxu1 %v2175_v8 }
  0xc8   : > { %1276 = vmatpush2.bf16.msra.mxu0 %v2170_v7 }
  0xc9   : > { %1277 = vmatprep.subr.bf16.mxu0 %v2178_v9 }
  0xca   : > { %1317 = vmatpush2.bf16.msra.mxu1 %v2173_v10 }
  0xcb   : > { %1318 = vmatprep.subr.bf16.mxu1 %v2181_v12 }
  0xcc   : > { %1278 = vmatpush2.bf16.msra.mxu0 %v2176_v11 }
  0xcd   : > { %1279 = vmatprep.subr.bf16.mxu0 %v2184_v13 }
  0xce   : > { %1319 = vmatpush2.bf16.msra.mxu1 %v2179_v14 }
  0xcf   : > { %1320 = vmatprep.subr.bf16.mxu1 %v2187_v16 }
  0xd0   : > { %1280 = vmatpush2.bf16.msra.mxu0 %v2182_v15 }
  0xd1   : > { %1281 = vmatprep.subr.bf16.mxu0 %v2190_v17 }
  0xd2   : > { %1321 = vmatpush2.bf16.msra.mxu1 %v2185_v18 }
  0xd3   : > { %1322 = vmatprep.subr.bf16.mxu1 %v2193_v20 }
  0xd4   : > { %1282 = vmatpush2.bf16.msra.mxu0 %v2188_v19 }
  0xd5   : > { %1283 = vmatprep.subr.bf16.mxu0 %v2196_v21 }
  0xd6   : > { %1323 = vmatpush2.bf16.msra.mxu1 %v2191_v22 }
  0xd7   : > { %1324 = vmatprep.subr.bf16.mxu1 %v2199_v24 }
  0xd8   : > { %1284 = vmatpush2.bf16.msra.mxu0 %v2194_v23 }
  0xd9   : > { %1285 = vmatprep.subr.bf16.mxu0 %v2202_v25 }
  0xda   : > { %1325 = vmatpush2.bf16.msra.mxu1 %v2197_v26 }
  0xdb   : > { %1326 = vmatprep.subr.bf16.mxu1 %v2205_v28 }
  0xdc   : > { %1286 = vmatpush2.bf16.msra.mxu0 %v2200_v27 }
  0xdd   : > { %1287 = vmatprep.subr.bf16.mxu0 %v2208_v30 }
  0xde   : > { %1327 = vmatpush2.bf16.msra.mxu1 %v2203_v31 }
  0xdf   : > { %1328 = vmatprep.subr.bf16.mxu1 %v2211_v33 }
  0xe0   : > { %1288 = vmatpush2.bf16.msra.mxu0 %v2206_v32 }
  0xe1   : > { %1289 = vmatprep.subr.bf16.mxu0 %v2214_v34 }
  0xe2   : > { %1329 = vmatpush2.bf16.msra.mxu1 %v2209_v35 }
  0xe3   : > { %1330 = vmatprep.subr.bf16.mxu1 %v2217_v37 }
  0xe4   : > { %1290 = vmatpush2.bf16.msra.mxu0 %v2212_v36 }
  0xe6   : > { %1331 = vmatpush2.bf16.msra.mxu1 %v2215_v38 }
  0xe7   : > { %1292 = vmatmul.mubr.bf16.vlgmr.msra.gmra.mxu0 %v2670_v29 }
  0xe9   : > { %1333 = vmatmul.mubr.bf16.vlgmr.msra.gmra.mxu1 %v2678_v41 }
 0x167   : > { %v1211_v39 = vpop.f32.mrf.mxu0 }
 0x169   : > { %v1213_v40 = vpop.f32.mrf.mxu0  ;;  %v1252_v42 = vpop.f32.mrf.mxu1 }
 0x16a   : > { %v1253_v43 = vadd.f32 %v1252_v42, %v1211_v39 }
 0x16b   : > { %v1215_v44 = vpop.f32.mrf.mxu0  ;;  %v1254_v45 = vpop.f32.mrf.mxu1 }
 0x16c   : > { %v1255_v46 = vadd.f32 %v1254_v45, %v1213_v40 }
 0x16d   : > { %v1216_v47 = vpop.f32.mrf.mxu0  ;;  %v1256_v48 = vpop.f32.mrf.mxu1 }
 0x16e   : > { %v1345_v49 = vcombine.low %v1253_v43, %v1255_v46 }
 0x16f   : > { %v1257_v50 = vpop.f32.mrf.mxu1 }
 0x170   : > { %v1353_v61 = vrot.slane %v1345_v49, %v2633_v52 }
 0x1a7   : > { %v1293_v51 = vpop.f32.mrf.mxu0 }
 0x1a9   : > { %v1295_v53 = vpop.f32.mrf.mxu0  ;;  %v1334_v54 = vpop.f32.mrf.mxu1 }
 0x1aa   : > { %v1335_v57 = vadd.f32 %v1334_v54, %v1293_v51 }
 0x1ab   : > { %v1297_v55 = vpop.f32.mrf.mxu0  ;;  %v1336_v56 = vpop.f32.mrf.mxu1 }
 0x1ac   : > { %v1337_v29 = vadd.f32 %v1336_v56, %v1295_v53 }
 0x1ad   : > { %v1298_v58 = vpop.f32.mrf.mxu0  ;;  %v1338_v41 = vpop.f32.mrf.mxu1 }
 0x1ae   : > { %v1346_v59 = vcombine.low %v1335_v57, %v1337_v29 }
 0x1af   : > { %v1339_v60 = vpop.f32.mrf.mxu1 }
 0x1b0   : > { %v1360_v62 = vrot.slane %v1346_v59, %v2633_v52 }
 0x1b2   : > { %v1361_v0 = vcombine.low %v1353_v61, %v1360_v62  ;;  %1368 = sbr.rel (%p1873_p3) target bundleno = 679 (0x2a7), region = 56 }
 0x1b4   : > { %v1363_v1 = vadd.f32 %v1361_v0, %v379_v63 }
 0x1b6   : > { %1364 = vst [vmem:[#allocation2] sm:$0xff] %v1363_v1 }
 0x1b7   : > { %v1435_v2 = vld [vmem:[#allocation8 + $0xf8] sm:$0xff]  ;;  %v1434_v6 = vld [vmem:[#allocation8 + $0xf0] sm:$0xff]  ;;  %v1433_v10 = vld [vmem:[#allocation8 + $0xe8] sm:$0xff] }
 0x1b8   : > { %v1467_v3 = vld [vmem:[#allocation8 + $0x1f8] sm:$0xff]  ;;  %1886 = vmatprep.subr.mxu0 %v1435_v2  ;;  %v1466_v7 = vld [vmem:[#allocation8 + $0x1f0] sm:$0xff]  ;;  %v1465_v11 = vld [vmem:[#allocation8 + $0x1e8] sm:$0xff] }
 0x1b9   : > { %v1419_v4 = vld [vmem:[#allocation8 + $0x78] sm:$0xff]  ;;  %1921 = vmatprep.subr.mxu1 %v1467_v3  ;;  %v1418_v8 = vld [vmem:[#allocation8 + $0x70] sm:$0xff]  ;;  %v1417_v12 = vld [vmem:[#allocation8 + $0x68] sm:$0xff] }
 0x1ba   : > { %v1451_v5 = vld [vmem:[#allocation8 + $0x178] sm:$0xff]  ;;  %1887 = vmatpush3.msra.mxu0 %v1419_v4  ;;  %v1450_v9 = vld [vmem:[#allocation8 + $0x170] sm:$0xff]  ;;  %v1449_v13 = vld [vmem:[#allocation8 + $0x168] sm:$0xff] }
 0x1bb   : > { %1922 = vmatpush3.msra.mxu1 %v1451_v5  ;;  %1888 = vmatprep.subr.mxu0 %v1434_v6  ;;  %v1432_v14 = vld [vmem:[#allocation8 + $0xe0] sm:$0xff]  ;;  %v1431_v18 = vld [vmem:[#allocation8 + $0xd8] sm:$0xff]  ;;  %v1430_v22 = vld [vmem:[#allocation8 + $0xd0] sm:$0xff] }
 0x1bc   : > { %1923 = vmatprep.subr.mxu1 %v1466_v7  ;;  %1889 = vmatpush3.msra.mxu0 %v1418_v8  ;;  %v1464_v15 = vld [vmem:[#allocation8 + $0x1e0] sm:$0xff]  ;;  %v1463_v19 = vld [vmem:[#allocation8 + $0x1d8] sm:$0xff]  ;;  %v1462_v23 = vld [vmem:[#allocation8 + $0x1d0] sm:$0xff] }
 0x1bd   : > { %1924 = vmatpush3.msra.mxu1 %v1450_v9  ;;  %1890 = vmatprep.subr.mxu0 %v1433_v10  ;;  %v1416_v16 = vld [vmem:[#allocation8 + $0x60] sm:$0xff]  ;;  %v1415_v20 = vld [vmem:[#allocation8 + $0x58] sm:$0xff]  ;;  %v1414_v24 = vld [vmem:[#allocation8 + $0x50] sm:$0xff] }
 0x1be   : > { %1925 = vmatprep.subr.mxu1 %v1465_v11  ;;  %v1448_v17 = vld [vmem:[#allocation8 + $0x160] sm:$0xff]  ;;  %1891 = vmatpush3.msra.mxu0 %v1417_v12  ;;  %v1447_v21 = vld [vmem:[#allocation8 + $0x158] sm:$0xff]  ;;  %v1446_v25 = vld [vmem:[#allocation8 + $0x150] sm:$0xff] }
 0x1bf   : > { %1926 = vmatpush3.msra.mxu1 %v1449_v13  ;;  %1892 = vmatprep.subr.mxu0 %v1432_v14  ;;  %v1429_v26 = vld [vmem:[#allocation8 + $0xc8] sm:$0xff]  ;;  %v1428_v31 = vld [vmem:[#allocation8 + $0xc0] sm:$0xff]  ;;  %v1427_v35 = vld [vmem:[#allocation8 + $0xb8] sm:$0xff] }
 0x1c0   : > { %1927 = vmatprep.subr.mxu1 %v1464_v15  ;;  %1893 = vmatpush3.msra.mxu0 %v1416_v16  ;;  %v1461_v27 = vld [vmem:[#allocation8 + $0x1c8] sm:$0xff]  ;;  %v1460_v32 = vld [vmem:[#allocation8 + $0x1c0] sm:$0xff]  ;;  %v1459_v36 = vld [vmem:[#allocation8 + $0x1b8] sm:$0xff] }
 0x1c1   : > { %1928 = vmatpush3.msra.mxu1 %v1448_v17  ;;  %1894 = vmatprep.subr.mxu0 %v1431_v18  ;;  %v1413_v28 = vld [vmem:[#allocation8 + $0x48] sm:$0xff]  ;;  %v1412_v33 = vld [vmem:[#allocation8 + $0x40] sm:$0xff]  ;;  %v1411_v37 = vld [vmem:[#allocation8 + $0x38] sm:$0xff] }
 0x1c2   : > { %1929 = vmatprep.subr.mxu1 %v1463_v19  ;;  %1895 = vmatpush3.msra.mxu0 %v1415_v20  ;;  %v1445_v30 = vld [vmem:[#allocation8 + $0x148] sm:$0xff]  ;;  %v1444_v34 = vld [vmem:[#allocation8 + $0x140] sm:$0xff]  ;;  %v1443_v38 = vld [vmem:[#allocation8 + $0x138] sm:$0xff] }
 0x1c3   : > { %1930 = vmatpush3.msra.mxu1 %v1447_v21  ;;  %1896 = vmatprep.subr.mxu0 %v1430_v22  ;;  %v1426_v39 = vld [vmem:[#allocation8 + $0xb0] sm:$0xff]  ;;  %v1425_v44 = vld [vmem:[#allocation8 + $0xa8] sm:$0xff]  ;;  %v1424_v48 = vld [vmem:[#allocation8 + $0xa0] sm:$0xff] }
 0x1c4   : > { %1931 = vmatprep.subr.mxu1 %v1462_v23  ;;  %1897 = vmatpush3.msra.mxu0 %v1414_v24  ;;  %v1458_v40 = vld [vmem:[#allocation8 + $0x1b0] sm:$0xff]  ;;  %v1457_v45 = vld [vmem:[#allocation8 + $0x1a8] sm:$0xff]  ;;  %v1456_v49 = vld [vmem:[#allocation8 + $0x1a0] sm:$0xff] }
 0x1c5   : > { %1932 = vmatpush3.msra.mxu1 %v1446_v25  ;;  %1898 = vmatprep.subr.mxu0 %v1429_v26  ;;  %v1410_v42 = vld [vmem:[#allocation8 + $0x30] sm:$0xff]  ;;  %v1409_v46 = vld [vmem:[#allocation8 + $0x28] sm:$0xff]  ;;  %v1408_v50 = vld [vmem:[#allocation8 + $0x20] sm:$0xff] }
 0x1c6   : > { %1933 = vmatprep.subr.mxu1 %v1461_v27  ;;  %1899 = vmatpush3.msra.mxu0 %v1413_v28  ;;  %v1442_v43 = vld [vmem:[#allocation8 + $0x130] sm:$0xff]  ;;  %v1441_v47 = vld [vmem:[#allocation8 + $0x128] sm:$0xff]  ;;  %v1440_v51 = vld [vmem:[#allocation8 + $0x120] sm:$0xff] }
 0x1c7   : > { %1934 = vmatpush3.msra.mxu1 %v1445_v30  ;;  %1900 = vmatprep.subr.mxu0 %v1428_v31  ;;  %v1369_v53 = vld [vmem:[#allocation2] sm:$0xff]  ;;  %v1423_v54 = vld [vmem:[#allocation8 + $0x98] sm:$0xff]  ;;  %v1422_v41 = vld [vmem:[#allocation8 + $0x90] sm:$0xff] }
 0x1c8   : > { %1935 = vmatprep.subr.mxu1 %v1460_v32  ;;  %1901 = vmatpush3.msra.mxu0 %v1412_v33  ;;  %v1455_v55 = vld [vmem:[#allocation8 + $0x198] sm:$0xff]  ;;  %v1469_v56 = vcombine.high %v1369_v53, %v1369_v53  ;;  %v1370_v57 = vmul.f32 %v1369_v53, %v1369_v53  ;;  %v1454_v59 = vld [vmem:[#allocation8 + $0x190] sm:$0xff]  ;;  %v1476_v60 = vrot.slane %v1369_v53, %v2633_v52  ;;  %v1421_v2 = vld [vmem:[#allocation8 + $0x88] sm:$0xff] }
 0x1c9   : > { %1936 = vmatpush3.msra.mxu1 %v1444_v34  ;;  %1902 = vmatprep.subr.mxu0 %v1427_v35  ;;  %v1407_v29 = vld [vmem:[#allocation8 + $0x18] sm:$0xff]  ;;  %v1406_v62 = vld [vmem:[#allocation8 + $0x10] sm:$0xff]  ;;  %v1453_v3 = vld [vmem:[#allocation8 + $0x188] sm:$0xff] }
 0x1ca   : > { %1937 = vmatprep.subr.mxu1 %v1459_v36  ;;  %1903 = vmatpush3.msra.mxu0 %v1411_v37  ;;  %v1439_v58 = vld [vmem:[#allocation8 + $0x118] sm:$0xff]  ;;  %v1372_v61 = vcombine.high %v1370_v57, %v1370_v57  ;;  %v1438_v63 = vld [vmem:[#allocation8 + $0x110] sm:$0xff]  ;;  %v1483_v0 = vrot.slane %v1469_v56, %v2633_v52  ;;  %v1379_v1 = vrot.slane %v1370_v57, %v2633_v52  ;;  %v1405_v5 = vld [vmem:[#allocation8 + $0x8] sm:$0xff] }
 0x1cb   : > { %1938 = vmatpush3.msra.mxu1 %v1443_v38  ;;  %1904 = vmatprep.subr.mxu0 %v1426_v39  ;;  %v1437_v6 = vld [vmem:[#allocation8 + $0x108] sm:$0xff]  ;;  %v1420_v9 = vld [vmem:[#allocation8 + $0x80] sm:$0xff]  ;;  %v1484_v11 = vcombine.high %v1476_v60, %v1476_v60 }
 0x1cc   : > { %1939 = vmatprep.subr.mxu1 %v1458_v40  ;;  %1905 = vmatpush3.msra.mxu0 %v1410_v42  ;;  %v1386_v4 = vrot.slane %v1372_v61, %v2633_v52  ;;  %v1387_v7 = vcombine.high %v1379_v1, %v1379_v1  ;;  %v1393_v8 = vsel %vm314_vm0, %v1379_v1, 0.0  ;;  %v1452_v10 = vld [vmem:[#allocation8 + $0x180] sm:$0xff]  ;;  %v1485_v14 = vcombine.high %v1483_v0, %v1483_v0  ;;  %v1874_v32 = vld [vmem:[%s2784_s3] ss:$0 sm:$0xff] }
 0x1cd   : > { %1940 = vmatpush3.msra.mxu1 %v1442_v43  ;;  %1906 = vmatprep.subr.mxu0 %v1425_v44  ;;  %v1404_v13 = vld [vmem:[#allocation8] sm:$0xff] }
 0x1ce   : > { %1941 = vmatprep.subr.mxu1 %v1457_v45  ;;  %1907 = vmatpush3.msra.mxu0 %v1409_v46  ;;  %v1388_v12 = vcombine.high %v1386_v4, %v1386_v4  ;;  %v1394_v15 = vsel %vm314_vm0, %v1387_v7, 0.0  ;;  %v1396_v52 = vsel %vm314_vm0, %v1386_v4, 0.0  ;;  %v1436_v16 = vld [vmem:[#allocation8 + $0x100] sm:$0xff] }
 0x1cf   : > { %1942 = vmatpush3.msra.mxu1 %v1441_v47  ;;  %1908 = vmatprep.subr.mxu0 %v1424_v48  ;;  %v1395_v17 = vadd.f32 %v1394_v15, %v1393_v8 }
 0x1d0   : > { %1943 = vmatprep.subr.mxu1 %v1456_v49  ;;  %1909 = vmatpush3.msra.mxu0 %v1408_v50  ;;  %v1398_v18 = vsel %vm314_vm0, %v1388_v12, 0.0 }
 0x1d1   : > { %1944 = vmatpush3.msra.mxu1 %v1440_v51  ;;  %1910 = vmatprep.subr.mxu0 %v1423_v54  ;;  %v1397_v19 = vadd.f32 %v1396_v52, %v1395_v17 }
 0x1d2   : > { %1945 = vmatprep.subr.mxu1 %v1455_v55  ;;  %1911 = vmatpush3.msra.mxu0 %v1407_v29 }
 0x1d3   : > { %1946 = vmatpush3.msra.mxu1 %v1439_v58  ;;  %1912 = vmatprep.subr.mxu0 %v1422_v41  ;;  %v1399_v20 = vadd.f32 %v1398_v18, %v1397_v19 }
 0x1d4   : > { %1947 = vmatprep.subr.mxu1 %v1454_v59  ;;  %1913 = vmatpush3.msra.mxu0 %v1406_v62 }
 0x1d5   : > { %1948 = vmatpush3.msra.mxu1 %v1438_v63  ;;  %1914 = vmatprep.subr.mxu0 %v1421_v2 }
 0x1d6   : > { %1949 = vmatprep.subr.mxu1 %v1453_v3  ;;  %1915 = vmatpush3.msra.mxu0 %v1405_v5 }
 0x1d7   : > { %1950 = vmatpush3.msra.mxu1 %v1437_v6  ;;  %1916 = vmatprep.subr.mxu0 %v1420_v9 }
 0x1d8   : > { %1951 = vmatprep.subr.mxu1 %v1452_v10  ;;  %1917 = vmatpush3.msra.mxu0 %v1404_v13 }
 0x1d9   : > { %1554 = vmatprep.mubr.f32.mxu0 %v1484_v11  ;;  %1952 = vmatpush3.msra.mxu1 %v1436_v16 }
 0x1da   : > { %1624 = vmatprep.mubr.f32.mxu1 %v1485_v14  ;;  %1555 = vmatmul.mubr.f32.vlgmr.msra.gmra.mxu0 %v1476_v60 }
 0x1db   : > { %1625 = vmatmul.mubr.f32.vlgmr.msra.gmra.mxu1 %v1483_v0  ;;  %1400 = vadd.xlane.f32.xlu0 %v1399_v20 }
 0x264   : > { %v1401_v21 = vpop.xlane.xlu0 %1400 }
 0x265   : > { %v1402_v22 = vadd.f32 1e-12, %v1401_v21 }
 0x267   : > { %2219 = vrsqrt.f32 %v1402_v22 }
 0x274   : > { %v2220_v30 = vpop.eup %2219 }
 0x29a   : > { %v1918_v23 = vpop.f32.mrf.mxu0 }
 0x29b   : > { %v1953_v24 = vpop.f32.mrf.mxu1 }
 0x29c   : > { %v1919_v25 = vpop.f32.mrf.mxu0 }
 0x29d   : > { %v1954_v26 = vpop.f32.mrf.mxu1  ;;  %v1920_v27 = vadd.f32 %v1919_v25, %v1918_v23 }
 0x29e   : > { %v1955_v28 = vadd.f32 %v1954_v26, %v1953_v24 }
 0x2a0   : > { %v1627_v31 = vadd.f32 %v1955_v28, %v1920_v27 }
 0x2a2   : > { %v1630_v33 = vmul.f32 %v2220_v30, %v1627_v31 }
 0x2a4   : > { %v1638_v34 = vadd.f32 %v1874_v32, %v1630_v33 }
 0x2a6   : > { %1639 = vst [vmem:[#allocation9] sm:$0x3] %v1638_v34 }
 0x2a7 PF: > { %p1982_p6 = scmp.eq.s32.totalorder %s2431_s19, 1  ;;  %s2386_s13 = smov [#allocation9]  }
 0x2a8   : > { %s1647_s8 = sshll.u32 %s2386_s13, 4  ;;  %s1648_s8 = int_to_ptr.vmem [resolvable:$true] %s1647_s8 }
 0x2a9   : > { %s2303_s15 = scalar_lea.vmem %s1648_s8, 32  ;;  %p2310_p9 = scmp.lt.s32.totalorder %s1648_s8, %s1648_s8 }
 0x2aa   : > { %p2304_p7 = scmp.ne.s32.totalorder %s1648_s8, %s2303_s15  ;;  %p2311_p13 = scmp.lt.s32.totalorder %s2303_s15, %s2303_s15 }
 0x2ac   : > { %p2305_p11 = pnand %p2304_p7, %p1982_p6  ;;  %p2312_p8 = por %p2311_p13, %p2310_p9 }
 0x2ae   : > { %p2306_p4 = pneg %p2305_p11 }
 0x2b0   : > { %p2313_p12 = pnand %p2312_p8, %p2306_p4 }
 0x2b2   : > { %2316 = shalt.err (!%p2313_p12)
}
 0x2b3   : > { %1965 = dma.vmem_to_hbm [thread:$0]  (%p1982_p6), %s1648_s8, 32, %s2785_s4, [#allocation5]  }
 0x2b4   : > { %2356 = dma.done.wait (%p1982_p6), [#allocation5], 32  }
 0x2b5   : > { %2358 = vsyncadd (%p1982_p6), [#allocation5], 4294967264 }
 0x2b6 PF: > { %p18_p2 = scmp.ge.s32.totalorder %s2434_s20, 4   ;;  %s2797_s15 = smov %s2365_s16 }
 0x2b7   : > { %s2798_s16 = smov %s2369_s17  ;;  %s2799_s17 = smov %s2444_s23 }
 0x2b8   : > { %s2800_s18 = smov %s2434_s20  ;;  %20 = sbr.rel (!%p18_p2) target bundleno = 6 (0x6), region = 98 }
 0x2bd   :  { %1660 = vsyncpa [#allocation4], 1 }
 0x2be   :  { %1662 = vsyncpa [#allocation4 + $0x1], 1 }
 0x2bf   :  { %1663 = vsyncpa [#allocation7], 1 }
 0x2c0   :  { %1665 = vsyncpa [#allocation7 + $0x1], 1 }
 0x2c1   :  { %1666 = vsyncpa [#allocation5], 1 }
 0x2c2   :  { %1668 = vsyncpa [#allocation5 + $0x1], 1 }

</bundles_post_ra>
